<compile_context>
chip_gen: v7x
topology: tpu7x:2x2x1
jax: 0.10.0
libtpu: 0.0.40
codegen_flags: <defaults>
</compile_context>

<pallas_src>
import functools
import math

import jax
import jax.numpy as jnp
from jax.experimental import pallas as pl
from jax.experimental.pallas import tpu as pltpu

_LANES = 128      # vreg lane width
_SUBLANES = 8     # vreg sublane count for 32-bit dtypes


def _round_up(x, m):
    return ((x + m - 1) // m) * m


def _device_kind():
    try:
        return jax.devices()[0].device_kind.lower()
    except Exception:
        return ""


def _mix_kernel(probs_ref, *refs, num_inputs):
    """out_tile = sum_k probs[k] * x_k_tile   (f32 accumulation, VPU only)."""
    x_refs = refs[:num_inputs]
    o_ref = refs[num_inputs]

    # probs live in SMEM: scalar loads, broadcast onto the (tr, 128) tiles.
    acc = probs_ref[0] * x_refs[0][...].astype(jnp.float32)
    for k in range(1, num_inputs):          # K is small and static -> unrolled
        acc = acc + probs_ref[k] * x_refs[k][...].astype(jnp.float32)

    o_ref[...] = acc.astype(o_ref.dtype)


def darts_input_choice(inputs, op_alpha, *, max_row_tile=8192):
    """Fused DartsInputChoice forward.

    inputs  : list/tuple of K arrays, all of identical shape/dtype (floating)
    op_alpha: (K,) architecture logits
    returns : array of the candidates' shape,
              sum_k softmax(op_alpha)[k] * inputs[k]
    """
    inputs = list(inputs)
    K = len(inputs)
    assert K >= 1 and op_alpha.shape == (K,)
    out_shape = inputs[0].shape
    out_dtype = inputs[0].dtype
    for x in inputs:
        assert x.shape == out_shape and x.dtype == out_dtype, \
            "all candidate inputs must share shape and dtype"
    assert jnp.issubdtype(out_dtype, jnp.floating), \
        "DartsInputChoice kernel expects floating-point candidates"

    total = int(math.prod(out_shape)) if out_shape else 1
    itemsize = jnp.dtype(out_dtype).itemsize
    # Native sublane granule: 8 rows for 32-bit, 16 for 16-bit, 32 for 8-bit.
    sub = _SUBLANES * max(1, 4 // itemsize)

    # Lane-dense slab: (rows, 128).  Pad the flat vector only if the element
    # count is not a multiple of 128 (padding is a real HBM pass, so skip it
    # whenever possible).  Partial *row* blocks (rows % tr != 0) are handled
    # by Pallas itself, so rows are never padded up to the tile size.
    rows = -(-total // _LANES)
    pad = rows * _LANES - total

    def _as_slab(x):
        xf = x.reshape(total)
        if pad:
            xf = jnp.pad(xf, (0, pad))
        return xf.reshape(rows, _LANES)

    xs = [_as_slab(x) for x in inputs]

    # ---- generation-aware tiling -----------------------------------------
    kind = _device_kind()
    if "v7" in kind:
        # 64 MiB physical VMEM, 2 TensorCores: tighter budget, >= 2 steps/TC.
        vmem_budget, vmem_limit, min_steps = 14 << 20, 48 << 20, 4
    elif "v6" in kind:
        # 128 MiB VMEM, 1 TC: big blocks to amortize per-step overhead.
        vmem_budget, vmem_limit, min_steps = 32 << 20, 64 << 20, 1
    else:
        # v5e / unknown: lowest scoped-VMEM default, stay conservative.
        vmem_budget, vmem_limit, min_steps = 12 << 20, 32 << 20, 1

    # Double-buffered footprint: 2 * (K inputs + 1 output) * tr * 128 * bytes.
    budget_rows = vmem_budget // (2 * (K + 1) * _LANES * itemsize)
    tr = max(sub, (min(budget_rows, max_row_tile) // sub) * sub)
    tr = min(tr, _round_up(rows, sub))          # block no larger than the slab
    if min_steps > 1:                           # v7x: keep both TCs pipelined
        tr = min(tr, max(sub, (rows // min_steps) // sub * sub))
    num_tiles = pl.cdiv(rows, tr)

    # softmax over the K logits: K tiny scalars, computed once in the wrapper
    # (matches F.softmax(op_alpha, -1)), fed to the kernel through SMEM.
    probs = jax.nn.softmax(op_alpha.astype(jnp.float32), axis=-1)

    kernel = functools.partial(_mix_kernel, num_inputs=K)

    out = pl.pallas_call(
        kernel,
        out_shape=jax.ShapeDtypeStruct((rows, _LANES), out_dtype),
        grid_spec=pltpu.PrefetchScalarGridSpec(
            num_scalar_prefetch=0,
            grid=(num_tiles,),
            in_specs=(
                # softmax probabilities: whole (K,) vector resident in SMEM
                [pl.BlockSpec(memory_space=pltpu.MemorySpace.SMEM)]
                # each candidate input: lane-dense (tr, 128) element tile
                + [pl.BlockSpec((tr, _LANES), lambda i: (i, 0))
                   for _ in range(K)]
            ),
            out_specs=pl.BlockSpec((tr, _LANES), lambda i: (i, 0)),
        ),
        compiler_params=pltpu.CompilerParams(
            dimension_semantics=("parallel",),
            vmem_limit_bytes=vmem_limit),
    )(probs, *xs)

    if pad:
        return out.reshape(rows * _LANES)[:total].reshape(out_shape)
    return out.reshape(out_shape)


def _reference(inputs, op_alpha):
    """Pure-JAX reference matching the PyTorch forward exactly."""
    x = jnp.stack(inputs)
    probs = jax.nn.softmax(op_alpha, axis=-1).reshape(
        (-1,) + (1,) * (x.ndim - 1))
    return jnp.sum(x * probs, axis=0)


if __name__ == "__main__":
    key = jax.random.PRNGKey(0)
    k_in, k_a = jax.random.split(key)

    N, C, H, W = 2, 4, 16, 16      # shape of each candidate input tensor
    K = 3                          # n_candidates in the input choice

    in_keys = jax.random.split(k_in, K)
    inputs = [jax.random.normal(k, (N, C, H, W), dtype=jnp.float32)
              for k in in_keys]
    # matches the module init: torch.randn(n_candidates) * 0.001
    op_alpha = 0.001 * jax.random.normal(k_a, (K,), dtype=jnp.float32)

    out = darts_input_choice(inputs, op_alpha)
    out = jax.block_until_ready(out)

    ref = _reference(inputs, op_alpha)
    assert out.shape == (N, C, H, W)
    assert jnp.allclose(out, ref, atol=1e-5, rtol=1e-5), "mismatch vs reference"

    print("KERNEL_OK")
</pallas_src>

<mosaic_0001>
module attributes {stable_mosaic.version = 11 : i64} {
  func.func @_mix_kernel(%arg0: i32, %arg1: memref<3xf32, #tpu.memory_space<smem>>, %arg2: memref<16x128xf32, #tpu.memory_space<vmem>>, %arg3: memref<16x128xf32, #tpu.memory_space<vmem>>, %arg4: memref<16x128xf32, #tpu.memory_space<vmem>>, %arg5: memref<16x128xf32, #tpu.memory_space<vmem>>) attributes {dimension_semantics = [#tpu.dimension_semantics<parallel>], iteration_bounds = array<i64: 1>, scalar_prefetch = 0 : i64, scratch_operands = 0 : i64, tpu.core_type = #tpu.core_type<tc>, window_params = [{transform_indices = @transform_0, window_bounds = array<i64: 3>}, {transform_indices = @transform_1, window_bounds = array<i64: 16, 128>}, {transform_indices = @transform_2, window_bounds = array<i64: 16, 128>}, {transform_indices = @transform_3, window_bounds = array<i64: 16, 128>}, {transform_indices = @transform_4, window_bounds = array<i64: 16, 128>}]} {
    %c0 = arith.constant 0 : index
    %0 = memref.load %arg1[%c0] : memref<3xf32, #tpu.memory_space<smem>>
    %c0_0 = arith.constant 0 : index
    %c0_1 = arith.constant 0 : index
    %1 = vector.load %arg2[%c0_0, %c0_1] : memref<16x128xf32, #tpu.memory_space<vmem>>, vector<16x128xf32>
    %2 = vector.broadcast %0 : f32 to vector<16x128xf32>
    %3 = arith.mulf %2, %1 : vector<16x128xf32>
    %c1 = arith.constant 1 : index
    %4 = memref.load %arg1[%c1] : memref<3xf32, #tpu.memory_space<smem>>
    %c0_2 = arith.constant 0 : index
    %c0_3 = arith.constant 0 : index
    %5 = vector.load %arg3[%c0_2, %c0_3] : memref<16x128xf32, #tpu.memory_space<vmem>>, vector<16x128xf32>
    %6 = vector.broadcast %4 : f32 to vector<16x128xf32>
    %7 = arith.mulf %6, %5 : vector<16x128xf32>
    %8 = arith.addf %3, %7 : vector<16x128xf32>
    %c2 = arith.constant 2 : index
    %9 = memref.load %arg1[%c2] : memref<3xf32, #tpu.memory_space<smem>>
    %c0_4 = arith.constant 0 : index
    %c0_5 = arith.constant 0 : index
    %10 = vector.load %arg4[%c0_4, %c0_5] : memref<16x128xf32, #tpu.memory_space<vmem>>, vector<16x128xf32>
    %11 = vector.broadcast %9 : f32 to vector<16x128xf32>
    %12 = arith.mulf %11, %10 : vector<16x128xf32>
    %13 = arith.addf %8, %12 : vector<16x128xf32>
    %c0_6 = arith.constant 0 : index
    %c0_7 = arith.constant 0 : index
    %14 = vector.load %arg5[%c0_6, %c0_7] : memref<16x128xf32, #tpu.memory_space<vmem>>, vector<16x128xf32>
    tpu.vector_store %arg5[%c0_6, %c0_7], %13 {strides = array<i32>} : memref<16x128xf32, #tpu.memory_space<vmem>>, vector<16x128xf32>,
    return
  }
  func.func @transform_0(%arg0: i32) -> i32 {
    %c0_i32 = arith.constant 0 : i32
    %c0_i32_0 = arith.constant 0 : i32
    return %c0_i32 : i32
  }
  func.func @transform_1(%arg0: i32) -> (i32, i32) {
    %c0_i32 = arith.constant 0 : i32
    %c0_i32_0 = arith.constant 0 : i32
    return %arg0, %c0_i32 : i32, i32
  }
  func.func @transform_2(%arg0: i32) -> (i32, i32) {
    %c0_i32 = arith.constant 0 : i32
    %c0_i32_0 = arith.constant 0 : i32
    return %arg0, %c0_i32 : i32, i32
  }
  func.func @transform_3(%arg0: i32) -> (i32, i32) {
    %c0_i32 = arith.constant 0 : i32
    %c0_i32_0 = arith.constant 0 : i32
    return %arg0, %c0_i32 : i32, i32
  }
  func.func @transform_4(%arg0: i32) -> (i32, i32) {
    %c0_i32 = arith.constant 0 : i32
    %c0_i32_0 = arith.constant 0 : i32
    return %arg0, %c0_i32 : i32, i32
  }
}

</mosaic_0001>

<bundles_post_ra>
// kernel: tpu_custom_call.1
= control target key start
LH: loop header
LB: loop body
LE: loop exit
PB: predicated region body
PF: predicated region fallthrough
CT: control target
= control target key end

     0   :  { %9 = vsyncpa [#allocation5], 0  ;;  %s332_s0 = inlined_call_operand.hbm [shape: f32[3], index: 0, kind: input, shape index: {}]   ;;  %s333_s1 = inlined_call_operand.hbm [shape: f32[16,128], index: 1, kind: input, shape index: {}]   ;;  %s334_s2 = inlined_call_operand.hbm [shape: f32[16,128], index: 2, kind: input, shape index: {}]   ;;  %s335_s3 = inlined_call_operand.hbm [shape: f32[16,128], index: 3, kind: input, shape index: {}]   ;;  %s336_s4 = inlined_call_operand.hbm [shape: f32[16,128], index: 4, kind: output, shape index: {}]  }
   0x1   :  { %10 = vsyncpa [#allocation3], 0 }
   0x2   :  { %11 = vsyncpa [#allocation8], 0 }
   0x3   :  { %12 = vsyncpa [#allocation4], 0  ;;  %s228_s15 = smov [#allocation7]   ;;  %s229_s17 = smov [#allocation6]  }
   0x4   :  { %s38_s16 = sshll.u32 %s228_s15, 4  ;;  %s26_s18 = sshll.u32 %s229_s17, 4  ;;  %s39_s16 = int_to_ptr.vmem [resolvable:$true] %s38_s16  ;;  %s27_s18 = int_to_ptr.vmem [resolvable:$true] %s26_s18 }
   0x5   :  { %s122_s21 = scalar_lea.hbm %s334_s2, 256 }
   0x6   :  { %p123_p0 = scmp.ne.s32.totalorder %s334_s2, %s122_s21  ;;  %p126_p1 = scmp.lt.u32.totalorder %s122_s21, %s334_s2 }
   0x8   :  { %p128_p2 = pnand %p126_p1, %p123_p0 }
   0xa   :  { %131 = shalt.err (!%p128_p2)
}
   0xb   :  { %s132_s26 = scalar_lea.vmem %s39_s16, 256  ;;  %p137_p4 = scmp.lt.s32.totalorder %s39_s16, %s39_s16 }
   0xc   :  { %p133_p3 = scmp.ne.s32.totalorder %s39_s16, %s132_s26  ;;  %p138_p5 = scmp.lt.s32.totalorder %s132_s26, %s132_s26 }
   0xe   :  { %p139_p6 = por %p138_p5, %p137_p4 }
  0x10   :  { %p140_p7 = pnand %p139_p6, %p133_p3 }
  0x12   :  { %143 = shalt.err (!%p140_p7)
}
  0x13   :  { %s230_s27 = smov 128   ;;  %s231_s28 = smov 8  }
  0x14   :  { %44 = dma.hbm_to_vmem [thread:$0]  %s334_s2, 256, %s39_s16, [#allocation8], %s230_s27, %s230_s27, %s231_s28  }
  0x15   :  { %s144_s7 = scalar_lea.hbm %s332_s0, 16 }
  0x16   :  { %p145_p8 = scmp.ne.s32.totalorder %s332_s0, %s144_s7  ;;  %p148_p9 = scmp.lt.u32.totalorder %s144_s7, %s332_s0 }
  0x18   :  { %p150_p10 = pnand %p148_p9, %p145_p8 }
  0x1a   :  { %153 = shalt.err (!%p150_p10)
}
  0x1b   :  { %s232_s12 = smov [#allocation2]   ;;  %s154_s16 = scalar_lea.hbm %s333_s1, 256 }
  0x1c   :  { %20 = dma.hbm_to_smem %s332_s0, 16, %s232_s12, [#allocation5]  }
  0x1d   :  { %p155_p11 = scmp.ne.s32.totalorder %s333_s1, %s154_s16  ;;  %p158_p12 = scmp.lt.u32.totalorder %s154_s16, %s333_s1 }
  0x1f   :  { %p160_p13 = pnand %p158_p12, %p155_p11 }
  0x21   :  { %163 = shalt.err (!%p160_p13)
}
  0x22   :  { %s164_s22 = scalar_lea.vmem %s27_s18, 256  ;;  %p169_p1 = scmp.lt.s32.totalorder %s27_s18, %s27_s18 }
  0x23   :  { %p165_p0 = scmp.ne.s32.totalorder %s27_s18, %s164_s22  ;;  %p170_p2 = scmp.lt.s32.totalorder %s164_s22, %s164_s22 }
  0x25   :  { %p171_p3 = por %p170_p2, %p169_p1 }
  0x27   :  { %p172_p4 = pnand %p171_p3, %p165_p0 }
  0x29   :  { %175 = shalt.err (!%p172_p4)
}
  0x2a   :  { %32 = dma.hbm_to_vmem [thread:$0]  %s333_s1, 256, %s27_s18, [#allocation3], %s230_s27, %s230_s27, %s231_s28  }
  0x2b   :  { %s233_s24 = smov [#allocation9]   ;;  %s176_s30 = scalar_lea.hbm %s335_s3, 256 }
  0x2c   :  { %s50_s25 = sshll.u32 %s233_s24, 4  ;;  %p177_p5 = scmp.ne.s32.totalorder %s335_s3, %s176_s30  ;;  %s51_s25 = int_to_ptr.vmem [resolvable:$true] %s50_s25 }
  0x2d   :  { %p180_p6 = scmp.lt.u32.totalorder %s176_s30, %s335_s3 }
  0x2f   :  { %p182_p7 = pnand %p180_p6, %p177_p5 }
  0x31   :  { %185 = shalt.err (!%p182_p7)
}
  0x32   :  { %s186_s9 = scalar_lea.vmem %s51_s25, 256  ;;  %p191_p9 = scmp.lt.s32.totalorder %s51_s25, %s51_s25 }
  0x33   :  { %p187_p8 = scmp.ne.s32.totalorder %s51_s25, %s186_s9  ;;  %p192_p10 = scmp.lt.s32.totalorder %s186_s9, %s186_s9 }
  0x35   :  { %p193_p11 = por %p192_p10, %p191_p9 }
  0x37   :  { %p194_p12 = pnand %p193_p11, %p187_p8 }
  0x39   :  { %197 = shalt.err (!%p194_p12)
}
  0x3a   :  { %56 = dma.hbm_to_vmem [thread:$0]  %s335_s3, 256, %s51_s25, [#allocation8], %s230_s27, %s230_s27, %s231_s28  }
  0x3b   :  { %220 = dma.done.wait [#allocation5], 16  }
  0x3c   :  { %221 = vsyncadd [#allocation5], 4294967280 }
  0x3d   :  { %222 = dma.done.wait [#allocation3], 256  }
  0x3e   :  { %223 = vsyncadd [#allocation3], 4294967040 }
  0x3f   :  { %224 = dma.done.wait [#allocation8], 512  }
  0x40   :  { %225 = vsyncadd [#allocation8], 4294966784 }
  0x41   :  { %69 = sfence }
  0x42   :  { %s70_s10 = sld [smem:[#allocation2]]  ;;  %s113_s11 = sld [smem:[#allocation2 + $0x1]]  ;;  %v71_v0 = vld [vmem:[#allocation6] sm:$0xff]  ;;  %v77_v1 = vld [vmem:[#allocation7] sm:$0xff]  ;;  %v72_v2 = vld [vmem:[#allocation6 + $0x8] sm:$0xff] }
  0x43   :  { %s114_s12 = sld [smem:[#allocation2 + $0x2]]  ;;  %v85_v3 = vld [vmem:[#allocation9] sm:$0xff]  ;;  %v78_v4 = vld [vmem:[#allocation7 + $0x8] sm:$0xff]  ;;  %v86_v5 = vld [vmem:[#allocation9 + $0x8] sm:$0xff]  ;;  %s234_s3 = smov [#allocation10]  }
  0x44   :  { %s99_s13 = sshll.u32 %s234_s3, 4  ;;  %s100_s13 = int_to_ptr.vmem [resolvable:$true] %s99_s13 }
  0x45   :  { %s198_s14 = scalar_lea.vmem %s100_s13, 256  ;;  %p203_p0 = scmp.lt.s32.totalorder %s100_s13, %s100_s13 }
  0x46   :  { %p199_p13 = scmp.ne.s32.totalorder %s100_s13, %s198_s14  ;;  %p204_p1 = scmp.lt.s32.totalorder %s198_s14, %s198_s14 }
  0x48   :  { %v73_v6 = vstv %s70_s10  ;;  %v79_v7 = vstv %s113_s11  ;;  %p205_p2 = por %p204_p1, %p203_p0 }
  0x49   :  { %v74_v8 = vmul.f32 %v73_v6, %v71_v0  ;;  %v80_v9 = vmul.f32 %v79_v7, %v77_v1  ;;  %v87_v10 = vstv %s114_s12  ;;  %v75_v11 = vmul.f32 %v73_v6, %v72_v2 }
  0x4a   :  { %v88_v12 = vmul.f32 %v87_v10, %v85_v3  ;;  %v81_v13 = vmul.f32 %v79_v7, %v78_v4  ;;  %v89_v14 = vmul.f32 %v87_v10, %v86_v5  ;;  %p206_p3 = pnand %p205_p2, %p199_p13 }
  0x4b   :  { %v82_v15 = vadd.f32 %v80_v9, %v74_v8 }
  0x4c   :  { %v83_v16 = vadd.f32 %v81_v13, %v75_v11 }
  0x4d   :  { %v90_v17 = vadd.f32 %v88_v12, %v82_v15 }
  0x4e   :  { %v91_v18 = vadd.f32 %v89_v14, %v83_v16 }
  0x4f   :  { %92 = vst [vmem:[#allocation10] sm:$0xff] %v90_v17 }
  0x50   :  { %93 = vst [vmem:[#allocation10 + $0x8] sm:$0xff] %v91_v18 }
  0x51   :  { %209 = shalt.err (!%p206_p3)
}
  0x52   :  { %s210_s16 = scalar_lea.hbm %s336_s4, 256 }
  0x53   :  { %p211_p4 = scmp.ne.s32.totalorder %s336_s4, %s210_s16  ;;  %p214_p5 = scmp.lt.u32.totalorder %s210_s16, %s336_s4 }
  0x55   :  { %p216_p6 = pnand %p214_p5, %p211_p4 }
  0x57   :  { %219 = shalt.err (!%p216_p6)
}
  0x58   :  { %105 = dma.vmem_to_hbm [thread:$0]  %s100_s13, 256, %s336_s4, [#allocation4], %s230_s27, %s230_s27, %s231_s28  }
  0x59   :  { %226 = dma.done.wait [#allocation4], 256  }
  0x5a   :  { %227 = vsyncadd [#allocation4], 4294967040 }
  0x5b   :  { %109 = vsyncpa [#allocation3], 1 }
  0x5c   :  { %110 = vsyncpa [#allocation8], 1 }
  0x5d   :  { %111 = vsyncpa [#allocation4], 1 }
  0x5e   :  { %112 = vsyncpa [#allocation5], 1 }

</bundles_post_ra>
